<compile_context>
chip_gen: v7x
topology: tpu7x:2x2x1
jax: 0.10.0
libtpu: 0.0.40
codegen_flags: <defaults>
</compile_context>

<pallas_src>
import jax
import jax.numpy as jnp
from jax.experimental import pallas as pl
from jax.experimental.pallas import tpu as pltpu


def _dot_attn_kernel(x_ref, e_ref, o_ref):
    # x_ref: (Bt, L, D)  word embeddings for Bt batch elements (streamed dtype)
    # e_ref: (Bt, 2, D)  precomputed entity embeddings (e1 row, e2 row)
    # o_ref: (1, Bt, L)  averaged attention weights for this tile
    x = x_ref[...]
    e = e_ref[...]

    # Scores: contract over D; both entity rows in one batched dot per element.
    # TODO(synk): if profiling ever shows the MXU slot binding (M=2 rows ->
    # ~2/256 utilization on v6e/v7x), recompute s on the VPU as a broadcast
    # multiply + reduce over D; at ~2 flops/byte the kernel is HBM-bound today.
    s = jnp.einsum('bmd,bld->bml', e, x,
                   preferred_element_type=jnp.float32)          # (Bt, 2, L) f32

    # Numerically stable softmax over L, all math in f32.  Exact divide (not
    # pl.reciprocal(approx=True)) so every output row sums to 1 to f32 eps --
    # downstream consumes these as normalized attention probabilities.
    s_max = jnp.max(s, axis=-1, keepdims=True)
    p = jnp.exp(s - s_max)
    w = p / jnp.sum(p, axis=-1, keepdims=True)                  # (Bt, 2, L)

    avg = 0.5 * jnp.sum(w, axis=1)                              # (Bt, L)
    o_ref[...] = avg[None].astype(o_ref.dtype)


def _round_up(v, m):
    return (v + m - 1) // m * m


def _vmem_budget():
    """(tile-selection budget, explicit scoped-VMEM limit) in bytes.

    Sized from the actual chip (64 MiB per TensorCore on v7x, 128 MiB on
    v5e/v6e) with headroom, instead of a hard-coded 16 MiB.
    """
    try:
        phys = int(pltpu.get_tpu_info().vmem_capacity_bytes)
    except Exception:
        phys = 64 * 1024 * 1024      # conservative fallback: v7x per-TC VMEM
    return int(phys * 0.70), int(phys * 0.85)


def _choose_block_b(B, L, D, itemsize, budget_bytes):
    """Pick the per-step batch tile Bt.

    Constraints: Bt divides B; double-buffered blocks + in-kernel f32
    temporaries fit `budget_bytes` *after* (8,128) sublane/lane padding;
    prefer sublane-aligned Bt (multiple of 8); keep >=4 grid steps when B
    permits (>=2 per TensorCore on v7x, pipeline overlap on v5e/v6e) without
    forcing the tile below one full sublane group.
    """
    Dp = _round_up(D, 128)
    Lp = _round_up(L, 128)
    L8 = _round_up(L, 8)
    per_elem = (2 * L8 * Dp * itemsize        # x block, double-buffered
                + 2 * 8 * Dp * itemsize       # e block, 2 -> 8 sublane pad, x2 buf
                + 2 * Lp * 4                  # output block, double-buffered
                + 3 * 8 * Lp * 4              # live f32 temps s, p, w (2 -> 8 pad)
                + Lp * 4)                     # averaged weights
    cap = max(1, budget_bytes // per_elem)
    if B > 8:
        cap = min(cap, max(B // 4, 8))

    best = None
    for bt in range(1, B + 1):
        if B % bt or bt > cap:
            continue
        if bt % 8 == 0 or bt == B:
            best = bt
    if best is None:                          # no sublane-aligned divisor fits
        best = max(bt for bt in range(1, B + 1) if B % bt == 0 and bt <= cap)
    return best


def dot_attn(x, e1_index, e2_index, *, block_b=None, compute_dtype=None,
             x_buffers=2):
    """dotAttn forward.

    x: (B, L, D) word embeddings; e*_index: (B, K) int32 token positions.
    Returns (B, L) attention weights = mean of the two entity softmaxes.

    compute_dtype: optionally stream x / entity embeddings in a narrower dtype
      (e.g. jnp.bfloat16) to halve HBM bytes on this bandwidth-bound kernel;
      the matmul accumulates in f32 and the softmax stays in f32.
    x_buffers: pipeline depth for the x stream (try 3 on v7x).
    """
    B, L, D = x.shape
    out_dtype = x.dtype

    # Entity embeddings in the JAX glue: sum of the K selected rows (duplicate
    # indices add up), matching batch_entity_hidden(..., cat_entity='sum').
    def _gather_sum(idx):
        return jnp.take_along_axis(x, idx[:, :, None], axis=1).sum(axis=1)   # (B, D)
    e = jnp.stack([_gather_sum(e1_index), _gather_sum(e2_index)], axis=1)    # (B, 2, D)

    if compute_dtype is not None:
        x_s = x.astype(compute_dtype)
        e_s = e.astype(compute_dtype)
    else:
        x_s, e_s = x, e
    itemsize = jnp.dtype(x_s.dtype).itemsize

    budget, vmem_limit = _vmem_budget()
    bt = block_b if block_b is not None else _choose_block_b(B, L, D, itemsize, budget)
    assert B % bt == 0, "block_b must divide B"
    nsteps = B // bt

    x_spec_kwargs = {}
    if x_buffers != 2:
        x_spec_kwargs["pipeline_mode"] = pl.Buffered(x_buffers)

    cost = pl.CostEstimate(
        flops=4 * B * L * D,                        # (2,D)x(D,L) matmul / element
        transcendentals=2 * B * L,                  # exp in the two softmaxes
        bytes_accessed=(B * L * D + 2 * B * D) * itemsize
                       + B * L * jnp.dtype(out_dtype).itemsize,
    )

    out = pl.pallas_call(
        _dot_attn_kernel,
        out_shape=jax.ShapeDtypeStruct((nsteps, bt, L), out_dtype),
        grid_spec=pltpu.PrefetchScalarGridSpec(
            num_scalar_prefetch=0,
            grid=(nsteps,),
            in_specs=[
                pl.BlockSpec((bt, L, D), lambda b: (b, 0, 0), **x_spec_kwargs),
                pl.BlockSpec((bt, 2, D), lambda b: (b, 0, 0)),
            ],
            out_specs=pl.BlockSpec((1, bt, L), lambda b: (b, 0, 0)),
        ),
        compiler_params=pltpu.CompilerParams(
            dimension_semantics=("parallel",),
            vmem_limit_bytes=vmem_limit,
        ),
        cost_estimate=cost,
    )(x_s, e_s)

    # (nsteps, bt, L) -> (B, L): contiguous reshape, no data movement.
    return out.reshape(B, L)


def _reference(x, e1_index, e2_index):
    def ent(idx):
        return jnp.take_along_axis(x, idx[:, :, None], axis=1).sum(axis=1)   # (B, D)
    e1 = ent(e1_index)
    e2 = ent(e2_index)
    s1 = jnp.einsum('bld,bd->bl', x, e1)
    s2 = jnp.einsum('bld,bd->bl', x, e2)
    return 0.5 * (jax.nn.softmax(s1, axis=1) + jax.nn.softmax(s2, axis=1))


if __name__ == "__main__":
    # dotAttn has no learnable parameters (empty __init__), nothing to init.
    B, L, D, K = 16, 8, 32, 2
    key = jax.random.PRNGKey(0)
    kx, k1, k2 = jax.random.split(key, 3)
    x = jax.random.normal(kx, (B, L, D), dtype=jnp.float32)
    e1_index = jax.random.randint(k1, (B, K), 0, L, dtype=jnp.int32)
    e2_index = jax.random.randint(k2, (B, K), 0, L, dtype=jnp.int32)

    ref = _reference(x, e1_index, e2_index)

    # f32 path: tight check against the pure-JAX reference.
    out = jax.block_until_ready(dot_attn(x, e1_index, e2_index))
    assert out.shape == (B, L)
    assert jnp.allclose(out, ref, atol=2e-3, rtol=2e-3), "mismatch vs reference"
    # exact softmax divide -> every averaged-weight row sums to 1 (f32 eps)
    assert jnp.allclose(out.sum(axis=1), jnp.ones((B,)), atol=1e-3)

    # bf16-streamed path (halves HBM bytes); softmax math stays in f32 so rows
    # still sum to 1 and the result stays close to the f32 reference.
    out_bf16 = jax.block_until_ready(
        dot_attn(x, e1_index, e2_index, compute_dtype=jnp.bfloat16))
    assert out_bf16.shape == (B, L)
    assert jnp.allclose(out_bf16.sum(axis=1), jnp.ones((B,)), atol=1e-2)
    assert float(jnp.max(jnp.abs(out_bf16 - ref))) < 0.1

    print("KERNEL_OK")
</pallas_src>

<mosaic_0001>
module attributes {stable_mosaic.version = 11 : i64} {
  func.func @_dot_attn_kernel(%arg0: i32, %arg1: memref<8x8x32xf32, #tpu.memory_space<vmem>>, %arg2: memref<8x2x32xf32, #tpu.memory_space<vmem>>, %arg3: memref<1x8x8xf32, #tpu.memory_space<vmem>>) attributes {dimension_semantics = [#tpu.dimension_semantics<parallel>], iteration_bounds = array<i64: 2>, scalar_prefetch = 0 : i64, scratch_operands = 0 : i64, tpu.core_type = #tpu.core_type<tc>, window_params = [{transform_indices = @transform_0, window_bounds = array<i64: 8, 8, 32>}, {transform_indices = @transform_1, window_bounds = array<i64: 8, 2, 32>}, {transform_indices = @transform_2, window_bounds = array<i64: 1, 8, 8>}]} {
    %c0 = arith.constant 0 : index
    %c0_0 = arith.constant 0 : index
    %c0_1 = arith.constant 0 : index
    %0 = vector.load %arg1[%c0, %c0_0, %c0_1] : memref<8x8x32xf32, #tpu.memory_space<vmem>>, vector<8x8x32xf32>
    %c0_2 = arith.constant 0 : index
    %c0_3 = arith.constant 0 : index
    %c0_4 = arith.constant 0 : index
    %1 = vector.load %arg2[%c0_2, %c0_3, %c0_4] : memref<8x2x32xf32, #tpu.memory_space<vmem>>, vector<8x2x32xf32>
    "tpu.trace_start"() <{level = 10 : i32, message = "bmd,bld->bml"}> : () -> ()
    %cst = arith.constant dense<0.000000e+00> : vector<8x2x8xf32>
    %2 = tpu.matmul %1, %0, %cst {dimension_numbers = #tpu.dot_dimension_numbers<[2], [2], [1], [1], [0, 0, 0, 1, 1, 1], [0], [0]>} : vector<8x2x32xf32>, vector<8x8x32xf32>, vector<8x2x8xf32> -> vector<8x2x8xf32>
    "tpu.trace_stop"() : () -> ()
    %cst_5 = arith.constant dense<0xFF800000> : vector<8x2xf32>
    %3 = vector.multi_reduction <maximumf>, %2, %cst_5 [2] : vector<8x2x8xf32> to vector<8x2xf32>
    %4 = vector.shape_cast %3 : vector<8x2xf32> to vector<8x2x1xf32>
    %5 = vector.broadcast %4 : vector<8x2x1xf32> to vector<8x2x8xf32>
    %6 = arith.subf %2, %5 : vector<8x2x8xf32>
    %7 = math.exp %6 : vector<8x2x8xf32>
    %cst_6 = arith.constant dense<0.000000e+00> : vector<8x2xf32>
    %8 = vector.multi_reduction <add>, %7, %cst_6 [2] : vector<8x2x8xf32> to vector<8x2xf32>
    %9 = vector.shape_cast %8 : vector<8x2xf32> to vector<8x2x1xf32>
    %10 = vector.broadcast %9 : vector<8x2x1xf32> to vector<8x2x8xf32>
    %11 = arith.divf %7, %10 : vector<8x2x8xf32>
    %cst_7 = arith.constant dense<0.000000e+00> : vector<8x8xf32>
    %12 = vector.multi_reduction <add>, %11, %cst_7 [1] : vector<8x2x8xf32> to vector<8x8xf32>
    %cst_8 = arith.constant 5.000000e-01 : f32
    %13 = vector.broadcast %cst_8 : f32 to vector<8x8xf32>
    %14 = arith.mulf %13, %12 : vector<8x8xf32>
    %15 = vector.shape_cast %14 : vector<8x8xf32> to vector<1x8x8xf32>
    %c0_9 = arith.constant 0 : index
    %c0_10 = arith.constant 0 : index
    %c0_11 = arith.constant 0 : index
    %16 = vector.load %arg3[%c0_9, %c0_10, %c0_11] : memref<1x8x8xf32, #tpu.memory_space<vmem>>, vector<1x8x8xf32>
    tpu.vector_store %arg3[%c0_9, %c0_10, %c0_11], %15 {strides = array<i32>} : memref<1x8x8xf32, #tpu.memory_space<vmem>>, vector<1x8x8xf32>,
    return
  }
  func.func @transform_0(%arg0: i32) -> (i32, i32, i32) {
    %c0_i32 = arith.constant 0 : i32
    %c0_i32_0 = arith.constant 0 : i32
    %c0_i32_1 = arith.constant 0 : i32
    return %arg0, %c0_i32, %c0_i32_0 : i32, i32, i32
  }
  func.func @transform_1(%arg0: i32) -> (i32, i32, i32) {
    %c0_i32 = arith.constant 0 : i32
    %c0_i32_0 = arith.constant 0 : i32
    %c0_i32_1 = arith.constant 0 : i32
    return %arg0, %c0_i32, %c0_i32_0 : i32, i32, i32
  }
  func.func @transform_2(%arg0: i32) -> (i32, i32, i32) {
    %c0_i32 = arith.constant 0 : i32
    %c0_i32_0 = arith.constant 0 : i32
    %c0_i32_1 = arith.constant 0 : i32
    return %arg0, %c0_i32, %c0_i32_0 : i32, i32, i32
  }
}

</mosaic_0001>

<bundles_post_ra>
// kernel: tpu_custom_call.1
= control target key start
LH: loop header
LB: loop body
LE: loop exit
PB: predicated region body
PF: predicated region fallthrough
CT: control target
= control target key end

     0   :  { %7 = vsyncpa [#allocation3], 0  ;;  %s1733_s0 = inlined_call_operand.hbm [shape: f32[16,8,32], index: 0, kind: input, shape index: {}]   ;;  %s1734_s1 = inlined_call_operand.hbm [shape: f32[16,2,32], index: 1, kind: input, shape index: {}]   ;;  %s1735_s2 = inlined_call_operand.hbm [shape: f32[2,8,8], index: 2, kind: output, shape index: {}]  }
   0x1   :  { %9 = vsyncpa [#allocation3 + $0x1], 0 }
   0x2   :  { %10 = vsyncpa [#allocation6], 0 }
   0x3   :  { %12 = vsyncpa [#allocation6 + $0x1], 0 }
   0x4   :  { %13 = vsyncpa [#allocation4], 0 }
   0x5   :  { %15 = vsyncpa [#allocation4 + $0x1], 0  ;;  %s1450_s9 = smov 0   ;;  %s1452_s10 = smov 0  }
   0x6   :  { %s1454_s11 = smov 0   ;;  %s1456_s12 = smov 0  }
   0x7 LB: > { %s1471_s13 = sadd.s32 4294967295, %s1424_s12   ;;  %s1114_s14 = sadd.s32 4294967294, %s1424_s12   ;;  %s1424_s12 = sphi %s1456_s12, %s1751_s12   ;;  %s1420_s11 = sphi %s1454_s11, %s1750_s11   ;;  %s1416_s10 = sphi %s1452_s10, %s1749_s10   ;;  %s1412_s9 = sphi %s1450_s9, %s1748_s9  }
   0x8   : > { %s1475_s15 = sadd.s32 1, %s1424_s12   ;;  %s28_s16 = sadd.s32 1, %s1420_s11 }
   0x9   : > { %s25_s17 = ssub.s32 %s1424_s12, %s1475_s15  ;;  %p35_p0 = scmp.ne.s32.totalorder %s1420_s11, %s1416_s10 }
   0xa   : > { %p26_p1 = scmp.eq.s32.totalorder %s25_s17, 0  ;;  %p36_p2 = scmp.eq.s32.totalorder %s1424_s12, 0 }
   0xb   : > { %p41_p3 = scmp.ne.s32.totalorder %s1416_s10, %s1412_s9  ;;  %p42_p4 = scmp.eq.s32.totalorder %s1471_s13, 0 }
   0xc   : > { %s1487_s18 = scalar_select %p26_p1, %s1420_s11, %s28_s16  }
   0xd   : > { %p1489_p5 = por %p36_p2, %p35_p0  ;;  %p1493_p6 = por %p42_p4, %p41_p3 }
   0xe   : > { %p91_p7 = scmp.eq.s32.totalorder %s1471_s13, 1  ;;  %p97_p8 = scmp.eq.s32.totalorder %s1114_s14, 1 }
   0xf   : > { %s1739_s20 = scalar_select %p1493_p6, 1, 0 }
  0x10   : > { %p1222_p10 = scmp.lt.s32.totalorder %s1424_s12, 2  ;;  %p1500_p11 = por %p91_p7, %p35_p0 }
  0x11   : > { %p1504_p12 = por %p97_p8, %p41_p3  ;;  %s1509_s23 = sand.u32 1, %s1420_s11  }
  0x12   : > { %s1740_s21 = scalar_select %p1500_p11, 1, 0 }
  0x13   : > { %s1741_s22 = scalar_select %p1504_p12, 1, 0 }
  0x14   : > { %s1147_s24 = sshll.u32 %s1424_s12, 10  ;;  %s1117_s25 = sshll.u32 %s1509_s23, 6 }
  0x15   : > { %s1516_s28 = scalar_lea.hbm %s1733_s0, %s1147_s24  ;;  %s121_s29 = scalar_lea.vmem [#allocation2], %s1117_s25 }
  0x16   : > { %s128_s30 = sshll.u32 %s121_s29, 4  ;;  %p1520_p13 = pnand %p1222_p10, %p1489_p5  ;;  %s1524_s30 = int_to_ptr.vmem [resolvable:$true] %s128_s30 }
  0x17   : > { %s118_s4 = scalar_lea.sflag [#allocation3], %s1509_s23  ;;  %s1294_s5 = scalar_lea.hbm %s1516_s28, 1024 }
  0x18   : > { %p1295_p0 = scmp.ne.s32.totalorder %s1516_s28, %s1294_s5  ;;  %p1296_p1 = pneg %p1520_p13 }
  0x19   : > { %s1299_s8 = scalar_lea.hbm %s1733_s0, 2048  ;;  %p1300_p4 = scmp.lt.u32.totalorder %s1516_s28, %s1733_s0 }
  0x1a   : > { %p1297_p2 = pnand %p1296_p1, %p1295_p0  ;;  %p1301_p5 = scmp.lt.u32.totalorder %s1299_s8, %s1294_s5 }
  0x1b   : > { %p1303_p8 = scmp.lt.u32.totalorder %s1294_s5, %s1516_s28 }
  0x1c   : > { %p1298_p3 = pneg %p1297_p2  ;;  %p1302_p7 = por %p1301_p5, %p1300_p4 }
  0x1e   : > { %p1304_p10 = por %p1303_p8, %p1302_p7 }
  0x20   : > { %p1305_p9 = pnand %p1304_p10, %p1298_p3 }
  0x22   : > { %1308 = shalt.err (!%p1305_p9)
}
  0x23   : > { %s1309_s17 = scalar_lea.vmem %s1524_s30, 1024  ;;  %s1426_s19 = smov [#allocation2]  }
  0x24   : > { %p1310_p0 = scmp.ne.s32.totalorder %s1524_s30, %s1309_s17  ;;  %s1314_s24 = sshll.u32 %s1426_s19, 4  ;;  %s1315_s24 = int_to_ptr.vmem [resolvable:$false] %s1314_s24 }
  0x25   : > { %s1316_s25 = scalar_lea.vmem %s1315_s24, 2048  ;;  %p1317_p11 = scmp.lt.s32.totalorder %s1524_s30, %s1315_s24 }
  0x26   : > { %p1312_p2 = pnand %p1310_p0, %p1296_p1  ;;  %p1318_p4 = scmp.lt.s32.totalorder %s1316_s25, %s1309_s17 }
  0x28   : > { %p1313_p12 = pneg %p1312_p2  ;;  %p1319_p5 = por %p1318_p4, %p1317_p11 }
  0x2a   : > { %p1320_p7 = pnand %p1319_p5, %p1313_p12 }
  0x2c   : > { %1323 = shalt.err (!%p1320_p7)
}
  0x2d   : > { %s1427_s26 = smov 128   ;;  %s1428_s27 = smov 8  }
  0x2e   : > { %1214 = dma.hbm_to_vmem [thread:$0]  (!%p1520_p13), %s1516_s28, 1024, %s1524_s30, %s118_s4, %s1427_s26, %s1427_s26, %s1428_s27  }
  0x2f   : > { %p1123_p9 = scmp.ge.s32.totalorder %s1424_s12, 1  ;;  %p157_p3 = scmp.lt.s32.totalorder %s1424_s12, 3 }
  0x30   : > { %s1120_s29 = sshll.u32 %s1509_s23, 4  ;;  %s1148_s6 = sshll.u32 %s1424_s12, 8 }
  0x31   : > { %p1557_p11 = pnand %p1123_p9, %p157_p3  ;;  %s142_s7 = scalar_lea.vmem [#allocation5], %s1120_s29 }
  0x32   : > { %s149_s8 = sshll.u32 %s142_s7, 4  ;;  %s1565_s17 = scalar_lea.hbm %s1734_s1, %s1148_s6  ;;  %s1567_s8 = int_to_ptr.vmem [resolvable:$true] %s149_s8 }
  0x33   : > { %s139_s28 = scalar_lea.sflag [#allocation6], %s1509_s23  ;;  %s1324_s30 = scalar_lea.hbm %s1565_s17, 256 }
  0x34   : > { %p1325_p12 = scmp.ne.s32.totalorder %s1565_s17, %s1324_s30  ;;  %s1329_s24 = scalar_lea.hbm %s1734_s1, 512 }
  0x35   : > { %p1330_p0 = scmp.lt.u32.totalorder %s1565_s17, %s1734_s1  ;;  %p1331_p2 = scmp.lt.u32.totalorder %s1329_s24, %s1324_s30 }
  0x36   : > { %p1327_p8 = pnand %p1325_p12, %p1296_p1  ;;  %p1333_p5 = scmp.lt.u32.totalorder %s1324_s30, %s1565_s17 }
  0x37   : > { %p1332_p4 = por %p1331_p2, %p1330_p0 }
  0x38   : > { %p1328_p10 = pneg %p1327_p8 }
  0x39   : > { %p1334_p7 = por %p1333_p5, %p1332_p4 }
  0x3b   : > { %p1335_p9 = pnand %p1334_p7, %p1328_p10 }
  0x3d   : > { %1338 = shalt.err (!%p1335_p9)
}
  0x3e   : > { %s1339_s27 = scalar_lea.vmem %s1567_s8, 256  ;;  %s1429_s29 = smov [#allocation5]  }
  0x3f   : > { %p1340_p3 = scmp.ne.s32.totalorder %s1567_s8, %s1339_s27  ;;  %s1344_s6 = sshll.u32 %s1429_s29, 4  ;;  %s1345_s6 = int_to_ptr.vmem [resolvable:$false] %s1344_s6 }
  0x40   : > { %s1346_s7 = scalar_lea.vmem %s1345_s6, 512  ;;  %p1347_p6 = scmp.lt.s32.totalorder %s1567_s8, %s1345_s6 }
  0x41   : > { %p1342_p12 = pnand %p1340_p3, %p1296_p1  ;;  %p1348_p0 = scmp.lt.s32.totalorder %s1346_s7, %s1339_s27 }
  0x43   : > { %p1343_p8 = pneg %p1342_p12  ;;  %p1349_p2 = por %p1348_p0, %p1347_p6 }
  0x45   : > { %p1350_p4 = pnand %p1349_p2, %p1343_p8 }
  0x47   : > { %1353 = shalt.err (!%p1350_p4)
}
  0x48   : > { %s1430_s14 = smov 32   ;;  %s1431_s16 = smov 2  }
  0x49   : > { %1217 = dma.hbm_to_vmem [thread:$0]  (!%p1520_p13), %s1565_s17, 256, %s1567_s8, %s139_s28, %s1430_s14, %s1430_s14, %s1431_s16  }
  0x4a   : > { %161 = sbr.rel (%p1557_p11) target bundleno = 663 (0x297), region = 28  ;;  %s1598_s30 = sand.u32 (!%p1557_p11), 1, %s1416_s10  }
  0x4b   : > { %s1124_s4 = sshll.u32 (!%p1557_p11), %s1598_s30, 6  ;;  %s164_s19 = scalar_lea.sflag (!%p1557_p11), [#allocation3], %s1598_s30 }
  0x4c   : > { %s1602_s24 = scalar_lea.vmem (!%p1557_p11), [#allocation2], %s1124_s4  ;;  %p1744_p6 = scmp.ne.s32.totalorder (!%p1557_p11), %s1739_s20, 0 }
  0x51   : > { %1399 = dma.done.wait (%p1744_p6), %s164_s19, 1024  }
  0x52   : > { %1401 = vsyncadd (%p1744_p6), %s164_s19, 4294966272  ;;  %s1125_s23 = sshll.u32 %s1598_s30, 4  ;;  %s173_s3 = scalar_lea.sflag [#allocation6], %s1598_s30 }
  0x53   : > { %s1610_s5 = scalar_lea.vmem [#allocation5], %s1125_s23 }
  0x54   : > { %1403 = dma.done.wait (%p1744_p6), %s173_s3, 256  }
  0x55   : > { %1405 = vsyncadd (%p1744_p6), %s173_s3, 4294967040  ;;  %v1432_v0 = vmov 0.0   ;;  %vm1433_vm0 = vmmov 0   ;;  %vm220_vm1 = vcmask 261120   ;;  %v204_v1 = vld [vmem:[%s1602_s24] sm:$0xff]  ;;  %v205_v2 = vld [vmem:[%s1602_s24 + $0x8] sm:$0xff] }
  0x56   : > { %1165 = vmatprep.subr.mxu0 %v1432_v0  ;;  %1167 = vmatprep.mubr.msk.f32.mxu0 %vm1433_vm0, %v1432_v0  ;;  %v212_v3 = vld [vmem:[%s1610_s5] sm:$0x3]  ;;  %v213_v4 = vld [vmem:[%s1610_s5 + $0x2] sm:$0x3]  ;;  %v207_v6 = vld [vmem:[%s1602_s24 + $0x18] sm:$0xff]  ;;  %vm829_vm2 = vcmask 58368  }
  0x57   : > { %1170 = vmatprep.subr.mxu1 %v1432_v0  ;;  %1172 = vmatprep.mubr.msk.f32.mxu1 %vm1433_vm0, %v1432_v0  ;;  %v206_v5 = vld [vmem:[%s1602_s24 + $0x10] sm:$0xff]  ;;  %v208_v8 = vld [vmem:[%s1602_s24 + $0x20] sm:$0xff]  ;;  %v209_v10 = vld [vmem:[%s1602_s24 + $0x28] sm:$0xff]  ;;  %vm990_vm3 = vcmask 1041409   ;;  %vm992_vm4 = vcmask 1042434   ;;  %vm994_vm5 = vcmask 1043459  }
  0x58   : > { %1166 = vmatpush3.xpose.msk.msra.mxu0 %vm220_vm1, %v204_v1  ;;  %1171 = vmatpush3.xpose.msk.msra.mxu1 %vm220_vm1, %v205_v2  ;;  %v214_v7 = vld [vmem:[%s1610_s5 + $0x4] sm:$0x3]  ;;  %v215_v9 = vld [vmem:[%s1610_s5 + $0x6] sm:$0x3]  ;;  %v216_v11 = vld [vmem:[%s1610_s5 + $0x8] sm:$0x3] }
  0x59   : > { %1175 = vmatprep.subr.mxu0 %v1432_v0  ;;  %1180 = vmatprep.subr.mxu1 %v1432_v0  ;;  %v210_v12 = vld [vmem:[%s1602_s24 + $0x30] sm:$0xff]  ;;  %v217_v13 = vld [vmem:[%s1610_s5 + $0xa] sm:$0x3]  ;;  %v218_v15 = vld [vmem:[%s1610_s5 + $0xc] sm:$0x3]  ;;  %s1126_s20 = sshll.u32 %s1598_s30, 3 }
  0x5a   : > { %v211_v14 = vld [vmem:[%s1602_s24 + $0x38] sm:$0xff]  ;;  %vm996_vm6 = vcmask 1044484   ;;  %vm998_vm7 = vcmask 1045509   ;;  %vm1000_vm8 = vcmask 1046534   ;;  %s1144_s8 = sshll.u32 %s1471_s13, 7  ;;  %s201_s17 = scalar_lea.vmem [#allocation7], %s1126_s20 }
  0x5b   : > { %1168 = vmatmul.mubr.msk.f32.vlgmr.msra.gmra.mrb[0].mxu0 %vm220_vm1, %v212_v3  ;;  %1173 = vmatmul.mubr.msk.f32.vlgmr.msra.gmra.mrb[0].mxu1 %vm220_vm1, %v213_v4  ;;  %v219_v16 = vld [vmem:[%s1610_s5 + $0xe] sm:$0x3]  ;;  %s1021_s28 = sshll.u32 %s201_s17, 4  ;;  %vm1002_vm9 = vcmask 1047559   ;;  %vm1005_vm10 = vcmask 64512   ;;  %s1689_s27 = scalar_lea.hbm %s1735_s2, %s1144_s8  ;;  %s1691_s28 = int_to_ptr.vmem [resolvable:$true] %s1021_s28 }
  0x5c   : > { %1176 = vmatpush3.xpose.msk.msra.mxu0 %vm220_vm1, %v206_v5  ;;  %1177 = vmatprep.mubr.msk.f32.mxu0 %vm1433_vm0, %v1432_v0  ;;  %s1008_s29 = scalar_lea.sflag [#allocation4], %s1598_s30  ;;  %s1354_s13 = scalar_lea.vmem %s1691_s28, 128 }
  0x5d   : > { %1185 = vmatprep.subr.mxu0 %v1432_v0  ;;  %1181 = vmatpush3.xpose.msk.msra.mxu1 %vm220_vm1, %v207_v6  ;;  %p1355_p13 = scmp.ne.s32.totalorder %s1691_s28, %s1354_s13  ;;  %p1745_p1 = scmp.ne.s32.totalorder %s1740_s21, 0 }
  0x5e   : > { %1182 = vmatprep.mubr.msk.f32.mxu1 %vm1433_vm0, %v1432_v0  ;;  %1190 = vmatprep.subr.mxu1 %v1432_v0  ;;  %s1434_s6 = smov [#allocation7]  }
  0x5f   : > { %1178 = vmatmul.mubr.msk.f32.vlgmr.msra.gmra.mrb[2].mxu0 %vm220_vm1, %v214_v7  ;;  %p1356_p11 = pnand %p1355_p13, %p1745_p1  ;;  %s1358_s7 = sshll.u32 %s1434_s6, 4  ;;  %s1359_s7 = int_to_ptr.vmem [resolvable:$false] %s1358_s7 }
  0x60   : > { %1186 = vmatpush3.xpose.msk.msra.mxu0 %vm220_vm1, %v208_v8  ;;  %1187 = vmatprep.mubr.msk.f32.mxu0 %vm1433_vm0, %v1432_v0  ;;  %s1360_s14 = scalar_lea.vmem %s1359_s7, 256  ;;  %p1361_p5 = scmp.lt.s32.totalorder %s1691_s28, %s1359_s7 }
  0x61   : > { %1183 = vmatmul.mubr.msk.f32.vlgmr.msra.gmra.mrb[2].mxu1 %vm220_vm1, %v215_v9  ;;  %1195 = vmatprep.subr.mxu0 %v1432_v0  ;;  %p1357_p10 = pneg %p1356_p11  ;;  %p1362_p7 = scmp.lt.s32.totalorder %s1360_s14, %s1354_s13 }
  0x62   : > { %1191 = vmatpush3.xpose.msk.msra.mxu1 %vm220_vm1, %v209_v10  ;;  %1192 = vmatprep.mubr.msk.f32.mxu1 %vm1433_vm0, %v1432_v0 }
  0x63   : > { %1188 = vmatmul.mubr.msk.f32.vlgmr.msra.gmra.mrb[4].mxu0 %vm220_vm1, %v216_v11  ;;  %1200 = vmatprep.subr.mxu1 %v1432_v0  ;;  %p1363_p9 = por %p1362_p7, %p1361_p5 }
  0x64   : > { %1196 = vmatpush3.xpose.msk.msra.mxu0 %vm220_vm1, %v210_v12  ;;  %1197 = vmatprep.mubr.msk.f32.mxu0 %vm1433_vm0, %v1432_v0 }
  0x65   : > { %1193 = vmatmul.mubr.msk.f32.vlgmr.msra.gmra.mrb[4].mxu1 %vm220_vm1, %v217_v13  ;;  %p1364_p3 = pnand %p1363_p9, %p1357_p10 }
  0x66   : > { %1201 = vmatpush3.xpose.msk.msra.mxu1 %vm220_vm1, %v211_v14  ;;  %1202 = vmatprep.mubr.msk.f32.mxu1 %vm1433_vm0, %v1432_v0 }
  0x67   : > { %1198 = vmatmul.mubr.msk.f32.vlgmr.msra.gmra.mrb[6].mxu0 %vm220_vm1, %v218_v15 }
  0x69   : > { %1203 = vmatmul.mubr.msk.f32.vlgmr.msra.gmra.mrb[6].mxu1 %vm220_vm1, %v219_v16 }
 0x12e   : > { %v293_v17 = vpop.f32.mrb[0].mxu0  ;;  %v369_v18 = vpop.f32.mrb[0].mxu1 }
 0x12f   : > { %v1169_v19 = vpop.f32.mrb[1].mxu0  ;;  %v830_v20 = vsel %vm829_vm2, %v293_v17, -inf  ;;  %v1174_v21 = vpop.f32.mrb[1].mxu1  ;;  %v833_v22 = vsel %vm829_vm2, %v369_v18, -inf }
 0x130   : > { %831 = vmax.xlane.f32.xlu0 %v830_v20 }
 0x132   : > { %v445_v23 = vpop.f32.mrb[2].mxu0 }
 0x133   : > { %v1179_v24 = vpop.f32.mrb[3].mxu0  ;;  %v836_v25 = vsel %vm829_vm2, %v445_v23, -inf }
 0x134   : > { %834 = vmax.xlane.f32.xlu0 %v833_v22  ;;  %837 = vmax.xlane.f32.xlu1 %v836_v25  ;;  %v521_v26 = vpop.f32.mrb[2].mxu1 }
 0x135   : > { %v1184_v27 = vpop.f32.mrb[3].mxu1  ;;  %v839_v28 = vsel %vm829_vm2, %v521_v26, -inf }
 0x136   : > { %v597_v29 = vpop.f32.mrb[4].mxu0 }
 0x137   : > { %v842_v30 = vsel %vm829_vm2, %v597_v29, -inf  ;;  %v1189_v31 = vpop.f32.mrb[5].mxu0 }
 0x138   : > { %840 = vmax.xlane.f32.xlu1 %v839_v28  ;;  %843 = vmax.xlane.f32.xlu0 %v842_v30  ;;  %v673_v32 = vpop.f32.mrb[4].mxu1 }
 0x139   : > { %v1194_v33 = vpop.f32.mrb[5].mxu1  ;;  %v845_v34 = vsel %vm829_vm2, %v673_v32, -inf }
 0x13a   : > { %v749_v35 = vpop.f32.mrb[6].mxu0 }
 0x13b   : > { %v848_v36 = vsel %vm829_vm2, %v749_v35, -inf  ;;  %v1199_v37 = vpop.f32.mrb[7].mxu0 }
 0x13c   : > { %846 = vmax.xlane.f32.xlu1 %v845_v34  ;;  %849 = vmax.xlane.f32.xlu0 %v848_v36  ;;  %v825_v38 = vpop.f32.mrb[6].mxu1 }
 0x13d   : > { %v1204_v39 = vpop.f32.mrb[7].mxu1  ;;  %v851_v40 = vsel %vm829_vm2, %v825_v38, -inf }
 0x140   : > { %852 = vmax.xlane.f32.xlu1 %v851_v40 }
 0x1bd   : > { %v832_v41 = vpop.xlane.xlu0 %831 }
 0x1be   : > { %v854_v42 = vsub.f32 %v293_v17, %v832_v41 }
 0x1c0   : > { %v862_v43 = vmul.f32 1.442695, %v854_v42 }
 0x1c1   : > { %v835_v44 = vpop.xlane.xlu0 %834  ;;  %v838_v45 = vpop.xlane.xlu1 %837 }
 0x1c2   : > { %1262 = vpow2.f32 %v862_v43  ;;  %v855_v46 = vsub.f32 %v369_v18, %v835_v44  ;;  %v856_v47 = vsub.f32 %v445_v23, %v838_v45 }
 0x1c4   : > { %v864_v48 = vmul.f32 1.442695, %v855_v46  ;;  %v866_v49 = vmul.f32 1.442695, %v856_v47 }
 0x1c5   : > { %v841_v50 = vpop.xlane.xlu1 %840  ;;  %v844_v51 = vpop.xlane.xlu0 %843 }
 0x1c6   : > { %1264 = vpow2.f32 %v864_v48  ;;  %v857_v52 = vsub.f32 %v521_v26, %v841_v50  ;;  %v858_v53 = vsub.f32 %v597_v29, %v844_v51 }
 0x1c7   : > { %1266 = vpow2.f32 %v866_v49 }
 0x1c8   : > { %v868_v54 = vmul.f32 1.442695, %v857_v52  ;;  %v870_v55 = vmul.f32 1.442695, %v858_v53 }
 0x1c9   : > { %v847_v56 = vpop.xlane.xlu1 %846  ;;  %v850_v57 = vpop.xlane.xlu0 %849 }
 0x1ca   : > { %1268 = vpow2.f32 %v868_v54  ;;  %v859_v58 = vsub.f32 %v673_v32, %v847_v56  ;;  %v860_v59 = vsub.f32 %v749_v35, %v850_v57 }
 0x1cb   : > { %1270 = vpow2.f32 %v870_v55 }
 0x1cc   : > { %v1263_v60 = vpop.eup %1262  ;;  %v872_v61 = vmul.f32 1.442695, %v859_v58  ;;  %v874_v62 = vmul.f32 1.442695, %v860_v59 }
 0x1cd   : > { %v853_v63 = vpop.xlane.xlu1 %852  ;;  %v878_v0 = vsel %vm829_vm2, %v1263_v60, 0.0 }
 0x1ce   : > { %1272 = vpow2.f32 %v872_v61  ;;  %v861_v1 = vsub.f32 %v825_v38, %v853_v63  ;;  %879 = vadd.xlane.f32.xlu0 %v878_v0 }
 0x1cf   : > { %1274 = vpow2.f32 %v874_v62 }
 0x1d0   : > { %v1265_v2 = vpop.eup %1264  ;;  %v876_v3 = vmul.f32 1.442695, %v861_v1 }
 0x1d1   : > { %v1267_v4 = vpop.eup %1266  ;;  %v881_v5 = vsel %vm829_vm2, %v1265_v2, 0.0 }
 0x1d2   : > { %1276 = vpow2.f32 %v876_v3  ;;  %882 = vadd.xlane.f32.xlu1 %v881_v5  ;;  %v884_v6 = vsel %vm829_vm2, %v1267_v4, 0.0 }
 0x1d3   : > { %885 = vadd.xlane.f32.xlu0 %v884_v6 }
 0x1d4   : > { %v1269_v7 = vpop.eup %1268 }
 0x1d5   : > { %v1271_v8 = vpop.eup %1270  ;;  %v887_v9 = vsel %vm829_vm2, %v1269_v7, 0.0 }
 0x1d6   : > { %888 = vadd.xlane.f32.xlu1 %v887_v9  ;;  %v890_v10 = vsel %vm829_vm2, %v1271_v8, 0.0 }
 0x1d7   : > { %891 = vadd.xlane.f32.xlu0 %v890_v10 }
 0x1d8   : > { %v1273_v11 = vpop.eup %1272 }
 0x1d9   : > { %v1275_v12 = vpop.eup %1274  ;;  %v893_v13 = vsel %vm829_vm2, %v1273_v11, 0.0 }
 0x1da   : > { %894 = vadd.xlane.f32.xlu1 %v893_v13  ;;  %v896_v14 = vsel %vm829_vm2, %v1275_v12, 0.0 }
 0x1db   : > { %897 = vadd.xlane.f32.xlu0 %v896_v14 }
 0x1dc   : > { %v1671_v15 = vpop.eup %1276 }
 0x1dd   : > { %v899_v16 = vsel %vm829_vm2, %v1671_v15, 0.0 }
 0x1de   : > { %900 = vadd.xlane.f32.xlu1 %v899_v16 }
 0x25b   : > { %v880_v17 = vpop.xlane.xlu0 %879 }
 0x25c   : > { %1278 = vrcp.f32 %v880_v17 }
 0x25f   : > { %v883_v18 = vpop.xlane.xlu1 %882 }
 0x260   : > { %1280 = vrcp.f32 %v883_v18  ;;  %v886_v19 = vpop.xlane.xlu0 %885 }
 0x261   : > { %1282 = vrcp.f32 %v886_v19 }
 0x263   : > { %v889_v20 = vpop.xlane.xlu1 %888 }
 0x264   : > { %1284 = vrcp.f32 %v889_v20  ;;  %v892_v21 = vpop.xlane.xlu0 %891 }
 0x265   : > { %1286 = vrcp.f32 %v892_v21 }
 0x266   : > { %v1279_v22 = vpop.eup %1278 }
 0x267   : > { %v903_v23 = vmul.f32 %v1279_v22, %v1263_v60  ;;  %v895_v24 = vpop.xlane.xlu1 %894 }
 0x268   : > { %1288 = vrcp.f32 %v895_v24  ;;  %v898_v25 = vpop.xlane.xlu0 %897 }
 0x269   : > { %v918_v26 = vsel %vm829_vm2, %v903_v23, 0.0  ;;  %1290 = vrcp.f32 %v898_v25 }
 0x26a   : > { %v1281_v27 = vpop.eup %1280  ;;  %v919_v28 = vrot.slane %v918_v26, 4 }
 0x26b   : > { %v1283_v29 = vpop.eup %1282  ;;  %v905_v30 = vmul.f32 %v1281_v27, %v1265_v2  ;;  %v901_v31 = vpop.xlane.xlu1 %900 }
 0x26c   : > { %v920_v32 = vadd.f32 %v919_v28, %v918_v26  ;;  %v907_v33 = vmul.f32 %v1283_v29, %v1267_v4  ;;  %1292 = vrcp.f32 %v901_v31 }
 0x26d   : > { %v925_v34 = vsel %vm829_vm2, %v905_v30, 0.0 }
 0x26e   : > { %v1285_v35 = vpop.eup %1284  ;;  %v921_v36 = vrot.slane %v920_v32, 2  ;;  %v926_v37 = vrot.slane %v925_v34, 4  ;;  %v932_v38 = vsel %vm829_vm2, %v907_v33, 0.0 }
 0x26f   : > { %v1287_v39 = vpop.eup %1286  ;;  %v933_v40 = vrot.slane %v932_v38, 4  ;;  %v909_v41 = vmul.f32 %v1285_v35, %v1269_v7 }
 0x270   : > { %v922_v42 = vadd.f32 %v921_v36, %v920_v32  ;;  %v927_v43 = vadd.f32 %v926_v37, %v925_v34  ;;  %v911_v44 = vmul.f32 %v1287_v39, %v1271_v8 }
 0x271   : > { %v934_v45 = vadd.f32 %v933_v40, %v932_v38  ;;  %v939_v46 = vsel %vm829_vm2, %v909_v41, 0.0 }
 0x272   : > { %v1289_v47 = vpop.eup %1288  ;;  %v923_v48 = vrot.slane %v922_v42, 1  ;;  %v928_v49 = vrot.slane %v927_v43, 2  ;;  %v940_v50 = vrot.slane %v939_v46, 4  ;;  %v946_v51 = vsel %vm829_vm2, %v911_v44, 0.0 }
 0x273   : > { %v1291_v52 = vpop.eup %1290  ;;  %v935_v53 = vrot.slane %v934_v45, 2  ;;  %v947_v54 = vrot.slane %v946_v51, 4  ;;  %v913_v55 = vmul.f32 %v1289_v47, %v1273_v11 }
 0x274   : > { %v929_v56 = vadd.f32 %v928_v49, %v927_v43  ;;  %v941_v57 = vadd.f32 %v940_v50, %v939_v46  ;;  %v915_v58 = vmul.f32 %v1291_v52, %v1275_v12  ;;  %v924_v63 = vadd.f32 %v923_v48, %v922_v42 }
 0x275   : > { %v936_v59 = vadd.f32 %v935_v53, %v934_v45  ;;  %v948_v60 = vadd.f32 %v947_v54, %v946_v51  ;;  %v953_v61 = vsel %vm829_vm2, %v913_v55, 0.0 }
 0x276   : > { %v1293_v62 = vpop.eup %1292  ;;  %v930_v0 = vrot.slane %v929_v56, 1  ;;  %v942_v1 = vrot.slane %v941_v57, 2  ;;  %v954_v2 = vrot.slane %v953_v61, 4  ;;  %v960_v5 = vsel %vm829_vm2, %v915_v58, 0.0 }
 0x277   : > { %v937_v3 = vrot.slane %v936_v59, 1  ;;  %v949_v4 = vrot.slane %v948_v60, 2  ;;  %v917_v6 = vmul.f32 %v1293_v62, %v1671_v15  ;;  %v961_v10 = vrot.slane %v960_v5, 4 }
 0x278   : > { %v931_v7 = vadd.f32 %v930_v0, %v929_v56  ;;  %v943_v8 = vadd.f32 %v942_v1, %v941_v57  ;;  %v955_v9 = vadd.f32 %v954_v2, %v953_v61  ;;  %v974_v19 = vmul.f32 0.5, %v924_v63 }
 0x279   : > { %v938_v11 = vadd.f32 %v937_v3, %v936_v59  ;;  %v950_v12 = vadd.f32 %v949_v4, %v948_v60  ;;  %v967_v13 = vsel %vm829_vm2, %v917_v6, 0.0  ;;  %v962_v18 = vadd.f32 %v961_v10, %v960_v5 }
 0x27a   : > { %v975_v14 = vmul.f32 0.5, %v931_v7  ;;  %v944_v16 = vrot.slane %v943_v8, 1  ;;  %v956_v17 = vrot.slane %v955_v9, 2  ;;  %v968_v21 = vrot.slane %v967_v13, 4 }
 0x27b   : > { %v951_v20 = vrot.slane %v950_v12, 1  ;;  %v976_v22 = vmul.f32 0.5, %v938_v11  ;;  %v963_v24 = vrot.slane %v962_v18, 2 }
 0x27c   : > { %v945_v23 = vadd.f32 %v944_v16, %v943_v8  ;;  %v957_v15 = vadd.f32 %v956_v17, %v955_v9  ;;  %v969_v26 = vadd.f32 %v968_v21, %v967_v13  ;;  %v991_v27 = vsel %vm990_vm3, %v975_v14, %v974_v19 }
 0x27d   : > { %v952_v25 = vadd.f32 %v951_v20, %v950_v12  ;;  %v964_v30 = vadd.f32 %v963_v24, %v962_v18  ;;  %v993_v35 = vsel %vm992_vm4, %v976_v22, %v991_v27 }
 0x27e   : > { %v977_v28 = vmul.f32 0.5, %v945_v23  ;;  %v958_v29 = vrot.slane %v957_v15, 1  ;;  %v970_v31 = vrot.slane %v969_v26, 2 }
 0x27f   : > { %v978_v32 = vmul.f32 0.5, %v952_v25  ;;  %v965_v34 = vrot.slane %v964_v30, 1 }
 0x280   : > { %v959_v33 = vadd.f32 %v958_v29, %v957_v15  ;;  %v971_v36 = vadd.f32 %v970_v31, %v969_v26  ;;  %v995_v37 = vsel %vm994_vm5, %v977_v28, %v993_v35 }
 0x281   : > { %v966_v38 = vadd.f32 %v965_v34, %v964_v30  ;;  %v997_v42 = vsel %vm996_vm6, %v978_v32, %v995_v37 }
 0x282   : > { %v979_v39 = vmul.f32 0.5, %v959_v33  ;;  %v972_v40 = vrot.slane %v971_v36, 1 }
 0x283   : > { %v980_v41 = vmul.f32 0.5, %v966_v38 }
 0x284   : > { %v973_v43 = vadd.f32 %v972_v40, %v971_v36  ;;  %v999_v44 = vsel %vm998_vm7, %v979_v39, %v997_v42 }
 0x285   : > { %v1001_v46 = vsel %vm1000_vm8, %v980_v41, %v999_v44 }
 0x286   : > { %v981_v45 = vmul.f32 0.5, %v973_v43 }
 0x288   : > { %v1003_v47 = vsel %vm1002_vm9, %v981_v45, %v1001_v46 }
 0x289   : > { %1006 = vst.msk [vmem:[%s201_s17] sm:$0xff] %vm1005_vm10, %v1003_v47 }
 0x28a   : > { %1367 = shalt.err (!%p1364_p3)
}
 0x28b   : > { %s1368_s16 = scalar_lea.hbm %s1689_s27, 128  ;;  %s1372_s19 = scalar_lea.hbm %s1735_s2, 256 }
 0x28c   : > { %p1369_p12 = scmp.ne.s32.totalorder %s1689_s27, %s1368_s16  ;;  %p1373_p2 = scmp.lt.u32.totalorder %s1689_s27, %s1735_s2 }
 0x28d   : > { %p1374_p4 = scmp.lt.u32.totalorder %s1372_s19, %s1368_s16  ;;  %p1376_p13 = scmp.lt.u32.totalorder %s1368_s16, %s1689_s27 }
 0x28e   : > { %p1370_p8 = pnand %p1369_p12, %p1745_p1 }
 0x28f   : > { %p1375_p6 = por %p1374_p4, %p1373_p2 }
 0x290   : > { %p1371_p0 = pneg %p1370_p8 }
 0x291   : > { %p1377_p11 = por %p1376_p13, %p1375_p6 }
 0x293   : > { %p1378_p10 = pnand %p1377_p11, %p1371_p0 }
 0x295   : > { %1381 = shalt.err (!%p1378_p10)
}
 0x296   : > { %1209 = dma.vmem_to_hbm [thread:$0]  (%p1745_p1), %s1691_s28, 128, %s1689_s27, %s1008_s29  }
 0x297 PF: > { %s1033_s3 = sand.u32 1, %s1412_s9   ;;  %p1746_p5 = scmp.ne.s32.totalorder %s1741_s22, 0 }
 0x298   : > { %p1747_p7 = scmp.ge.s32.totalorder %s1424_s12, 2  ;;  %s1034_s5 = scalar_lea.sflag [#allocation4], %s1033_s3 }
 0x29a   : > { %p1219_p9 = pnand %p1747_p7, %p1746_p5 }
 0x29c   : > { %1407 = dma.done.wait (!%p1219_p9), %s1034_s5, 128  }
 0x29d   : > { %1409 = vsyncadd (!%p1219_p9), %s1034_s5, 4294967168  ;;  %p18_p3 = scmp.ge.s32.totalorder %s1475_s15, 4   ;;  %s1748_s9 = smov %s1416_s10 }
 0x29e   : > { %s1749_s10 = smov %s1420_s11  ;;  %s1750_s11 = smov %s1487_s18 }
 0x29f   : > { %s1751_s12 = smov %s1475_s15  ;;  %20 = sbr.rel (!%p18_p3) target bundleno = 7 (0x7), region = 86 }
 0x2a6   :  { %1039 = vsyncpa [#allocation3], 1 }
 0x2a7   :  { %1041 = vsyncpa [#allocation3 + $0x1], 1 }
 0x2a8   :  { %1042 = vsyncpa [#allocation6], 1 }
 0x2a9   :  { %1044 = vsyncpa [#allocation6 + $0x1], 1 }
 0x2aa   :  { %1045 = vsyncpa [#allocation4], 1 }
 0x2ab   :  { %1047 = vsyncpa [#allocation4 + $0x1], 1 }

</bundles_post_ra>
